<compile_context>
chip_gen: v6e
topology: v6e:2x2x1
jax: 0.10.0
libtpu: 0.0.40
codegen_flags: <defaults>
</compile_context>

<pallas_src>
import functools

import jax
import jax.numpy as jnp
from jax.experimental import pallas as pl
from jax.experimental.pallas import tpu as pltpu


def _channel_shuffle_kernel(x_ref, o_ref, *, num_groups, cpg):
    # x_ref / o_ref: (1, C, blk) VMEM tiles.  out row i*g+j <- in row j*cpg+i.
    num_ch = num_groups * cpg
    for c_out in range(num_ch):
        c_in = (c_out % num_groups) * cpg + (c_out // num_groups)
        o_ref[0, c_out, :] = x_ref[0, c_in, :]


def _pick_hw_block(hw, max_lanes=2048):
    """Largest multiple-of-128 divisor of hw up to max_lanes, else full hw."""
    if hw % 128 != 0:
        return hw          # full extent is always a legal (if masked) block
    best = 128
    cand = 128
    while cand <= min(hw, max_lanes):
        if hw % cand == 0:
            best = cand
        cand += 128
    return best


def channel_shuffle(x_nchw, num_groups):
    """x_nchw: (B, C, H, W) -> channel-shuffled (B, C, H, W)."""
    B, C, H, W = x_nchw.shape
    assert C % num_groups == 0, "channels must be divisible by num_groups"
    cpg = C // num_groups
    HW = H * W
    blk = _pick_hw_block(HW)

    x2 = x_nchw.reshape(B, C, HW)            # free reshape; HW on lanes
    kernel = functools.partial(_channel_shuffle_kernel,
                               num_groups=num_groups, cpg=cpg)

    itemsize = jnp.dtype(x_nchw.dtype).itemsize
    out2 = pl.pallas_call(
        kernel,
        out_shape=jax.ShapeDtypeStruct((B, C, HW), x_nchw.dtype),
        grid=(B, HW // blk),
        in_specs=[pl.BlockSpec((1, C, blk), lambda b, t: (b, 0, t))],
        out_specs=pl.BlockSpec((1, C, blk), lambda b, t: (b, 0, t)),
        compiler_params=pltpu.CompilerParams(
            dimension_semantics=("parallel", "parallel")),
        cost_estimate=pl.CostEstimate(
            flops=0,
            transcendentals=0,
            bytes_accessed=2 * B * C * HW * itemsize),
    )(x2)
    return out2.reshape(B, C, H, W)


def _reference(x_nchw, num_groups):
    B, C, H, W = x_nchw.shape
    cpg = C // num_groups
    x = x_nchw.reshape(B, num_groups, cpg, H, W)
    x = jnp.transpose(x, (0, 2, 1, 3, 4))
    return x.reshape(B, C, H, W)


if __name__ == "__main__":
    B, C, H, W = 2, 8, 16, 16
    num_groups = 4

    key = jax.random.PRNGKey(0)
    x = jax.random.normal(key, (B, C, H, W), jnp.float32)

    out = channel_shuffle(x, num_groups)
    out = jax.block_until_ready(out)

    ref = _reference(x, num_groups)
    assert out.shape == ref.shape
    assert jnp.array_equal(out, ref), float(jnp.max(jnp.abs(out - ref)))

    print("KERNEL_OK")
</pallas_src>

<mosaic_0001>
module attributes {stable_mosaic.version = 11 : i64} {
  func.func @_channel_shuffle_kernel(%arg0: i32, %arg1: i32, %arg2: memref<1x8x256xf32, #tpu.memory_space<vmem>>, %arg3: memref<1x8x256xf32, #tpu.memory_space<vmem>>) attributes {dimension_semantics = [#tpu.dimension_semantics<parallel>, #tpu.dimension_semantics<parallel>], iteration_bounds = array<i64: 2, 1>, scalar_prefetch = 0 : i64, scratch_operands = 0 : i64, tpu.core_type = #tpu.core_type<tc>, window_params = [{transform_indices = @transform_0, window_bounds = array<i64: 1, 8, 256>}, {transform_indices = @transform_1, window_bounds = array<i64: 1, 8, 256>}]} {
    %c0 = arith.constant 0 : index
    %c0_0 = arith.constant 0 : index
    %c0_1 = arith.constant 0 : index
    %0 = vector.load %arg2[%c0, %c0_0, %c0_1] : memref<1x8x256xf32, #tpu.memory_space<vmem>>, vector<1x1x256xf32>
    %1 = vector.shape_cast %0 : vector<1x1x256xf32> to vector<256xf32>
    %c0_2 = arith.constant 0 : index
    %c0_3 = arith.constant 0 : index
    %c0_4 = arith.constant 0 : index
    %2 = vector.load %arg3[%c0_2, %c0_3, %c0_4] : memref<1x8x256xf32, #tpu.memory_space<vmem>>, vector<1x1x256xf32>
    %3 = vector.shape_cast %2 : vector<1x1x256xf32> to vector<256xf32>
    %4 = vector.shape_cast %1 : vector<256xf32> to vector<1x1x256xf32>
    tpu.vector_store %arg3[%c0_2, %c0_3, %c0_4], %4 {strides = array<i32>} : memref<1x8x256xf32, #tpu.memory_space<vmem>>, vector<1x1x256xf32>,
    %c0_5 = arith.constant 0 : index
    %c2 = arith.constant 2 : index
    %c0_6 = arith.constant 0 : index
    %5 = vector.load %arg2[%c0_5, %c2, %c0_6] : memref<1x8x256xf32, #tpu.memory_space<vmem>>, vector<1x1x256xf32>
    %6 = vector.shape_cast %5 : vector<1x1x256xf32> to vector<256xf32>
    %c0_7 = arith.constant 0 : index
    %c1 = arith.constant 1 : index
    %c0_8 = arith.constant 0 : index
    %7 = vector.load %arg3[%c0_7, %c1, %c0_8] : memref<1x8x256xf32, #tpu.memory_space<vmem>>, vector<1x1x256xf32>
    %8 = vector.shape_cast %7 : vector<1x1x256xf32> to vector<256xf32>
    %9 = vector.shape_cast %6 : vector<256xf32> to vector<1x1x256xf32>
    tpu.vector_store %arg3[%c0_7, %c1, %c0_8], %9 {strides = array<i32>} : memref<1x8x256xf32, #tpu.memory_space<vmem>>, vector<1x1x256xf32>,
    %c0_9 = arith.constant 0 : index
    %c4 = arith.constant 4 : index
    %c0_10 = arith.constant 0 : index
    %10 = vector.load %arg2[%c0_9, %c4, %c0_10] : memref<1x8x256xf32, #tpu.memory_space<vmem>>, vector<1x1x256xf32>
    %11 = vector.shape_cast %10 : vector<1x1x256xf32> to vector<256xf32>
    %c0_11 = arith.constant 0 : index
    %c2_12 = arith.constant 2 : index
    %c0_13 = arith.constant 0 : index
    %12 = vector.load %arg3[%c0_11, %c2_12, %c0_13] : memref<1x8x256xf32, #tpu.memory_space<vmem>>, vector<1x1x256xf32>
    %13 = vector.shape_cast %12 : vector<1x1x256xf32> to vector<256xf32>
    %14 = vector.shape_cast %11 : vector<256xf32> to vector<1x1x256xf32>
    tpu.vector_store %arg3[%c0_11, %c2_12, %c0_13], %14 {strides = array<i32>} : memref<1x8x256xf32, #tpu.memory_space<vmem>>, vector<1x1x256xf32>,
    %c0_14 = arith.constant 0 : index
    %c6 = arith.constant 6 : index
    %c0_15 = arith.constant 0 : index
    %15 = vector.load %arg2[%c0_14, %c6, %c0_15] : memref<1x8x256xf32, #tpu.memory_space<vmem>>, vector<1x1x256xf32>
    %16 = vector.shape_cast %15 : vector<1x1x256xf32> to vector<256xf32>
    %c0_16 = arith.constant 0 : index
    %c3 = arith.constant 3 : index
    %c0_17 = arith.constant 0 : index
    %17 = vector.load %arg3[%c0_16, %c3, %c0_17] : memref<1x8x256xf32, #tpu.memory_space<vmem>>, vector<1x1x256xf32>
    %18 = vector.shape_cast %17 : vector<1x1x256xf32> to vector<256xf32>
    %19 = vector.shape_cast %16 : vector<256xf32> to vector<1x1x256xf32>
    tpu.vector_store %arg3[%c0_16, %c3, %c0_17], %19 {strides = array<i32>} : memref<1x8x256xf32, #tpu.memory_space<vmem>>, vector<1x1x256xf32>,
    %c0_18 = arith.constant 0 : index
    %c1_19 = arith.constant 1 : index
    %c0_20 = arith.constant 0 : index
    %20 = vector.load %arg2[%c0_18, %c1_19, %c0_20] : memref<1x8x256xf32, #tpu.memory_space<vmem>>, vector<1x1x256xf32>
    %21 = vector.shape_cast %20 : vector<1x1x256xf32> to vector<256xf32>
    %c0_21 = arith.constant 0 : index
    %c4_22 = arith.constant 4 : index
    %c0_23 = arith.constant 0 : index
    %22 = vector.load %arg3[%c0_21, %c4_22, %c0_23] : memref<1x8x256xf32, #tpu.memory_space<vmem>>, vector<1x1x256xf32>
    %23 = vector.shape_cast %22 : vector<1x1x256xf32> to vector<256xf32>
    %24 = vector.shape_cast %21 : vector<256xf32> to vector<1x1x256xf32>
    tpu.vector_store %arg3[%c0_21, %c4_22, %c0_23], %24 {strides = array<i32>} : memref<1x8x256xf32, #tpu.memory_space<vmem>>, vector<1x1x256xf32>,
    %c0_24 = arith.constant 0 : index
    %c3_25 = arith.constant 3 : index
    %c0_26 = arith.constant 0 : index
    %25 = vector.load %arg2[%c0_24, %c3_25, %c0_26] : memref<1x8x256xf32, #tpu.memory_space<vmem>>, vector<1x1x256xf32>
    %26 = vector.shape_cast %25 : vector<1x1x256xf32> to vector<256xf32>
    %c0_27 = arith.constant 0 : index
    %c5 = arith.constant 5 : index
    %c0_28 = arith.constant 0 : index
    %27 = vector.load %arg3[%c0_27, %c5, %c0_28] : memref<1x8x256xf32, #tpu.memory_space<vmem>>, vector<1x1x256xf32>
    %28 = vector.shape_cast %27 : vector<1x1x256xf32> to vector<256xf32>
    %29 = vector.shape_cast %26 : vector<256xf32> to vector<1x1x256xf32>
    tpu.vector_store %arg3[%c0_27, %c5, %c0_28], %29 {strides = array<i32>} : memref<1x8x256xf32, #tpu.memory_space<vmem>>, vector<1x1x256xf32>,
    %c0_29 = arith.constant 0 : index
    %c5_30 = arith.constant 5 : index
    %c0_31 = arith.constant 0 : index
    %30 = vector.load %arg2[%c0_29, %c5_30, %c0_31] : memref<1x8x256xf32, #tpu.memory_space<vmem>>, vector<1x1x256xf32>
    %31 = vector.shape_cast %30 : vector<1x1x256xf32> to vector<256xf32>
    %c0_32 = arith.constant 0 : index
    %c6_33 = arith.constant 6 : index
    %c0_34 = arith.constant 0 : index
    %32 = vector.load %arg3[%c0_32, %c6_33, %c0_34] : memref<1x8x256xf32, #tpu.memory_space<vmem>>, vector<1x1x256xf32>
    %33 = vector.shape_cast %32 : vector<1x1x256xf32> to vector<256xf32>
    %34 = vector.shape_cast %31 : vector<256xf32> to vector<1x1x256xf32>
    tpu.vector_store %arg3[%c0_32, %c6_33, %c0_34], %34 {strides = array<i32>} : memref<1x8x256xf32, #tpu.memory_space<vmem>>, vector<1x1x256xf32>,
    %c0_35 = arith.constant 0 : index
    %c7 = arith.constant 7 : index
    %c0_36 = arith.constant 0 : index
    %35 = vector.load %arg2[%c0_35, %c7, %c0_36] : memref<1x8x256xf32, #tpu.memory_space<vmem>>, vector<1x1x256xf32>
    %36 = vector.shape_cast %35 : vector<1x1x256xf32> to vector<256xf32>
    %c0_37 = arith.constant 0 : index
    %c7_38 = arith.constant 7 : index
    %c0_39 = arith.constant 0 : index
    %37 = vector.load %arg3[%c0_37, %c7_38, %c0_39] : memref<1x8x256xf32, #tpu.memory_space<vmem>>, vector<1x1x256xf32>
    %38 = vector.shape_cast %37 : vector<1x1x256xf32> to vector<256xf32>
    %39 = vector.shape_cast %36 : vector<256xf32> to vector<1x1x256xf32>
    tpu.vector_store %arg3[%c0_37, %c7_38, %c0_39], %39 {strides = array<i32>} : memref<1x8x256xf32, #tpu.memory_space<vmem>>, vector<1x1x256xf32>,
    return
  }
  func.func @transform_0(%arg0: i32, %arg1: i32) -> (i32, i32, i32) {
    %c0_i32 = arith.constant 0 : i32
    %c0_i32_0 = arith.constant 0 : i32
    return %arg0, %c0_i32, %arg1 : i32, i32, i32
  }
  func.func @transform_1(%arg0: i32, %arg1: i32) -> (i32, i32, i32) {
    %c0_i32 = arith.constant 0 : i32
    %c0_i32_0 = arith.constant 0 : i32
    return %arg0, %c0_i32, %arg1 : i32, i32, i32
  }
}

</mosaic_0001>

<bundles_post_ra>
// kernel: tpu_custom_call.1
= control target key start
LH: loop header
LB: loop body
LE: loop exit
PB: predicated region body
PF: predicated region fallthrough
CT: control target
= control target key end

     0   :  { %6 = vsyncpa [#allocation3], 0  ;;  %s677_s0 = inlined_call_operand.hbm [shape: f32[2,8,256], index: 0, kind: input, shape index: {}]   ;;  %s678_s1 = inlined_call_operand.hbm [shape: f32[2,8,256], index: 1, kind: output, shape index: {}]  }
   0x1   :  { %8 = vsyncpa [#allocation3 + $0x1], 0 }
   0x2   :  { %9 = vsyncpa [#allocation4], 0 }
   0x3   :  { %11 = vsyncpa [#allocation4 + $0x1], 0  ;;  %s511_s6 = smov 0   ;;  %s513_s7 = smov 0  }
   0x4   :  { %s515_s8 = smov 0   ;;  %s517_s9 = smov 0  }
   0x5   :  { %s519_s10 = smov 0   ;;  %s521_s11 = smov 0  }
   0x6 LB: > { %s296_s12 = sadd.s32 4294967295, %s497_s11   ;;  %s297_s13 = sadd.s32 4294967294, %s497_s11   ;;  %s497_s11 = sphi %s521_s11, %s17_s11   ;;  %s493_s10 = sphi %s519_s10, %s692_s10   ;;  %s489_s9 = sphi %s517_s9, %s691_s9   ;;  %s485_s8 = sphi %s515_s8, %s690_s8   ;;  %s481_s7 = sphi %s513_s7, %s689_s7   ;;  %s477_s6 = sphi %s511_s6, %s688_s6  }
   0x7   : > { %s29_s14 = sadd.s32 1, %s493_s10  ;;  %s38_s15 = sadd.s32 1, %s485_s8 }
   0x8   : > { %p31_p0 = scmp.ge.s32.totalorder %s29_s14, 2  ;;  %p45_p1 = scmp.ne.s32.totalorder %s485_s8, %s481_s7 }
   0x9   : > { %p46_p2 = scmp.eq.s32.totalorder %s497_s11, 0  ;;  %p51_p3 = scmp.ne.s32.totalorder %s481_s7, %s477_s6 }
   0xa   : > { %s694_s14 = smov (%p31_p0, %s29_s14), 0  ;;  %p52_p5 = scmp.eq.s32.totalorder %s296_s12, 0 }
   0xb   : > { %p552_p4 = por %p46_p2, %p45_p1  ;;  %s33_s17 = ssub.s32 %s493_s10, %s694_s14 }
   0xc   : > { %p77_p6 = scmp.eq.s32.totalorder %s296_s12, 1  ;;  %p36_p7 = scmp.eq.s32.totalorder %s33_s17, 0 }
   0xd   : > { %p558_p8 = por %p52_p5, %p51_p3  ;;  %p83_p10 = scmp.eq.s32.totalorder %s297_s13, 1 }
   0xe   : > { %p562_p9 = por %p77_p6, %p45_p1  ;;  %p339_p13 = scmp.lt.s32.totalorder %s497_s11, 2 }
   0xf   : > { %s567_s20 = scalar_select %p36_p7, %s485_s8, %s38_s15  }
  0x10   : > { %p569_p11 = por %p83_p10, %p51_p3  ;;  %s103_s22 = sand.u32 1, %s485_s8  }
  0x11   : > { %s300_s23 = sshll.u32 %s103_s22, 4  ;;  %s325_s24 = sshll.u32 %s493_s10, 8 }
  0x12   : > { %s682_s21 = scalar_select %p569_p11, 1, 0 }
  0x13   : > { %s115_s27 = scalar_lea.hbm %s677_s0, %s325_s24  ;;  %s107_s28 = scalar_lea.vmem [#allocation2], %s300_s23 }
  0x14   : > { %s117_s29 = sshll.u32 %s107_s28, 4  ;;  %p582_p0 = pnand %p339_p13, %p552_p4  ;;  %s118_s29 = int_to_ptr.vmem [resolvable:$true] %s117_s29 }
  0x15   : > { %p303_p1 = scmp.ge.s32.totalorder %s497_s11, 1  ;;  %p122_p2 = scmp.lt.s32.totalorder %s497_s11, 3 }
  0x16   : > { %s104_s2 = scalar_lea.sflag [#allocation3], %s103_s22  ;;  %p391_p3 = pneg %p582_p0 }
  0x17   : > { %s402_s3 = scalar_lea.vmem %s118_s29, 256  ;;  %s499_s4 = smov [#allocation2]  }
  0x18   : > { %p403_p5 = scmp.ne.s32.totalorder %s118_s29, %s402_s3  ;;  %s407_s5 = sshll.u32 %s499_s4, 4  ;;  %s408_s5 = int_to_ptr.vmem [resolvable:$false] %s407_s5 }
  0x19   : > { %s409_s12 = scalar_lea.vmem %s408_s5, 512  ;;  %p410_p10 = scmp.lt.s32.totalorder %s118_s29, %s408_s5 }
  0x1a   : > { %p405_p6 = pnand %p403_p5, %p391_p3  ;;  %p411_p12 = scmp.lt.s32.totalorder %s409_s12, %s402_s3 }
  0x1c   : > { %p406_p7 = pneg %p405_p6  ;;  %p412_p4 = por %p411_p12, %p410_p10 }
  0x1e   : > { %p413_p13 = pnand %p412_p4, %p406_p7 }
  0x20   : > { %416 = shalt.err (!%p413_p13)
}
  0x21   : > { %334 = dma.hbm_to_vmem [thread:$0]  (!%p582_p0), %s115_s27, 256, %s118_s29, %s104_s2  }
  0x22   : > { %p123_p11 = pnand %p303_p1, %p122_p2 }
  0x23   : > { %s597_s13 = sand.u32 (!%p123_p11), 1, %s481_s7  }
  0x24   : > { %126 = sbr.rel (%p123_p11) target bundleno = 72 (0x48), region = 24  ;;  %s304_s15 = sshll.u32 (!%p123_p11), %s597_s13, 4 }
  0x25   : > { %s129_s16 = scalar_lea.sflag (!%p123_p11), [#allocation3], %s597_s13  ;;  %s132_s17 = scalar_lea.vmem (!%p123_p11), [#allocation2], %s304_s15 }
  0x29   : > { %468 = dma.done.wait (%p558_p8), %s129_s16, 256  }
  0x2a   : > { %470 = vsyncadd (%p558_p8), %s129_s16, 4294967040  ;;  %v154_v0 = vlaneseq  ;;  %s326_s22 = sshll.u32 %s489_s9, 8  ;;  %s150_s23 = scalar_lea.vmem [#allocation5], %s304_s15  ;;  %v153_v2 = vld [vmem:[%s132_s17] ss:$8 sm:$0x3] }
  0x2b   : > { %s212_s24 = sshll.u32 %s150_s23, 4  ;;  %v306_v3 = vld [vmem:[%s132_s17 + $0x2] ss:$8 sm:$0x3]  ;;  %s621_s25 = scalar_lea.hbm %s678_s1, %s326_s22  ;;  %s623_s24 = int_to_ptr.vmem [resolvable:$true] %s212_s24 }
  0x2c   : > { %vm605_vm0 = vcmp.lt.s32.totalorder %v154_v0, 256  ;;  %v308_v4 = vld [vmem:[%s132_s17 + $0x4] ss:$8 sm:$0x3]  ;;  %s196_s26 = scalar_lea.sflag [#allocation4], %s597_s13  ;;  %s417_s27 = scalar_lea.vmem %s623_s24, 256 }
  0x2d   : > { %158 = vst.msk [vmem:[%s150_s23] ss:$8 sm:$0x3] %vm605_vm0, %v153_v2  ;;  %307 = vst.msk [vmem:[%s150_s23 + $0x1] ss:$8 sm:$0x3] %vm605_vm0, %v306_v3  ;;  %p418_p8 = scmp.ne.s32.totalorder %s623_s24, %s417_s27 }
  0x2e   : > { %v310_v5 = vld [vmem:[%s132_s17 + $0x6] ss:$8 sm:$0x3]  ;;  %309 = vst.msk [vmem:[%s150_s23 + $0x2] ss:$8 sm:$0x3] %vm605_vm0, %v308_v4 }
  0x2f   : > { %311 = vst.msk [vmem:[%s150_s23 + $0x3] ss:$8 sm:$0x3] %vm605_vm0, %v310_v5  ;;  %v312_v6 = vld [vmem:[%s132_s17 + $0x1] ss:$8 sm:$0x3]  ;;  %p419_p11 = pnand %p418_p8, %p562_p9 }
  0x30   : > { %v314_v7 = vld [vmem:[%s132_s17 + $0x3] ss:$8 sm:$0x3]  ;;  %313 = vst.msk [vmem:[%s150_s23 + $0x4] ss:$8 sm:$0x3] %vm605_vm0, %v312_v6 }
  0x31   : > { %315 = vst.msk [vmem:[%s150_s23 + $0x5] ss:$8 sm:$0x3] %vm605_vm0, %v314_v7  ;;  %v316_v8 = vld [vmem:[%s132_s17 + $0x5] ss:$8 sm:$0x3]  ;;  %p420_p12 = pneg %p419_p11 }
  0x32   : > { %v318_v9 = vld [vmem:[%s132_s17 + $0x7] ss:$8 sm:$0x3]  ;;  %317 = vst.msk [vmem:[%s150_s23 + $0x6] ss:$8 sm:$0x3] %vm605_vm0, %v316_v8 }
  0x33   : > { %319 = vst.msk [vmem:[%s150_s23 + $0x7] ss:$8 sm:$0x3] %vm605_vm0, %v318_v9  ;;  %s500_s28 = smov [#allocation5]  }
  0x34   : > { %s421_s29 = sshll.u32 %s500_s28, 4  ;;  %s422_s29 = int_to_ptr.vmem [resolvable:$false] %s421_s29 }
  0x35   : > { %s423_s30 = scalar_lea.vmem %s422_s29, 512  ;;  %p424_p0 = scmp.lt.s32.totalorder %s623_s24, %s422_s29 }
  0x36   : > { %p425_p1 = scmp.lt.s32.totalorder %s423_s30, %s417_s27 }
  0x38   : > { %p426_p2 = por %p425_p1, %p424_p0 }
  0x3a   : > { %p427_p3 = pnand %p426_p2, %p420_p12 }
  0x3c   : > { %430 = shalt.err (!%p427_p3)
}
  0x3d   : > { %s431_s2 = scalar_lea.hbm %s621_s25, 256  ;;  %s435_s5 = scalar_lea.hbm %s678_s1, 512 }
  0x3e   : > { %p432_p5 = scmp.ne.s32.totalorder %s621_s25, %s431_s2  ;;  %p436_p10 = scmp.lt.s32.totalorder %s621_s25, %s678_s1 }
  0x3f   : > { %p437_p4 = scmp.lt.s32.totalorder %s435_s5, %s431_s2 }
  0x40   : > { %p433_p6 = pnand %p432_p5, %p562_p9 }
  0x41   : > { %p438_p13 = por %p437_p4, %p436_p10 }
  0x42   : > { %p434_p7 = pneg %p433_p6 }
  0x44   : > { %p439_p8 = pnand %p438_p13, %p434_p7 }
  0x46   : > { %442 = shalt.err (!%p439_p8)
}
  0x47   : > { %329 = dma.vmem_to_hbm [thread:$0]  (%p562_p9), %s623_s24, 256, %s621_s25, %s196_s26  }
  0x48 PF: > { %s224_s15 = sand.u32 1, %s477_s6   ;;  %p686_p11 = scmp.ne.s32.totalorder %s682_s21, 0 }
  0x49   : > { %p687_p12 = scmp.ge.s32.totalorder %s497_s11, 2  ;;  %s225_s16 = scalar_lea.sflag [#allocation4], %s224_s15 }
  0x4b   : > { %p336_p0 = pnand %p687_p12, %p686_p11 }
  0x4d   : > { %p337_p1 = pneg %p336_p0 }
  0x4f   : > { %472 = dma.done.wait (%p337_p1), %s225_s16, 256  }
  0x50   : > { %474 = vsyncadd (%p337_p1), %s225_s16, 4294967040  ;;  %s17_s11 = sadd.s32 1, %s497_s11   ;;  %s688_s6 = smov %s481_s7 }
  0x51   : > { %p14_p2 = scmp.ge.s32.totalorder %s17_s11, 4   ;;  %s689_s7 = smov %s485_s8 }
  0x52   : > { %s690_s8 = smov %s567_s20  ;;  %s691_s9 = smov %s493_s10 }
  0x53   : > { %s692_s10 = smov %s694_s14  ;;  %16 = sbr.rel (!%p14_p2) target bundleno = 6 (0x6), region = 83 }
  0x58   :  { %230 = vsyncpa [#allocation3], 1 }
  0x59   :  { %232 = vsyncpa [#allocation3 + $0x1], 1 }
  0x5a   :  { %233 = vsyncpa [#allocation4], 1 }
  0x5b   :  { %235 = vsyncpa [#allocation4 + $0x1], 1 }

</bundles_post_ra>
